<compile_context>
chip_gen: v6e
topology: v6e:2x2x1
jax: 0.10.0
libtpu: 0.0.40
codegen_flags: <defaults>
</compile_context>

<pallas_src>
import jax
import jax.numpy as jnp
from jax.experimental import pallas as pl
from jax.experimental.pallas import tpu as pltpu


def _leaky_relu(x, slope=0.01):
    return jnp.where(x > 0, x, slope * x)


def _layernorm(h, gamma, beta, eps=1e-5):
    # f32 row stats; the reduce goes to the XLU slot and rsqrt to the EUP slot.
    mu = jnp.mean(h, axis=-1, keepdims=True)
    var = jnp.mean((h - mu) * (h - mu), axis=-1, keepdims=True)
    return (h - mu) * jax.lax.rsqrt(var + eps) * gamma + beta


def block_embedding_kernel(
    typ_ref, prop_ref, fp_ref,
    embw0_ref,
    wfp_ref, bfp_ref, gfp_ref, befp_ref,
    wpr_ref, bpr_ref, gpr_ref, bepr_ref,
    w0fp_ref, w0pr_ref, b0_ref,
    w1_ref, b1_ref,
    w2_ref, b2_ref,
    out_ref,
):
    cdt = wfp_ref.dtype                 # matmul feed dtype (bf16 in production)
    tile_n = typ_ref.shape[0]
    n_type = embw0_ref.shape[0]

    # Embedding lookup folded through the first MLP layer:
    #   x_typ @ W0[:n_hid] == onehot(typ) @ (emb @ W0[:n_hid]) == onehot @ embw0
    typ = typ_ref[...]                                            # (T, 1) int32
    iota = jax.lax.broadcasted_iota(jnp.int32, (tile_n, n_type), 1)
    onehot = (iota == typ).astype(cdt)                            # exact 0/1 in bf16
    h = jnp.dot(onehot, embw0_ref[...], preferred_element_type=jnp.float32)

    # Linear -> LayerNorm -> LeakyReLU (Dropout is identity in eval mode).
    def lin_ln_act(x, w_ref, b_ref, g_ref, be_ref):
        y = jnp.dot(x, w_ref[...], preferred_element_type=jnp.float32) + b_ref[...]
        return _leaky_relu(_layernorm(y, g_ref[...], be_ref[...]))

    x_fp = lin_ln_act(fp_ref[...], wfp_ref, bfp_ref, gfp_ref, befp_ref)    # f32
    x_pr = lin_ln_act(prop_ref[...], wpr_ref, bpr_ref, gpr_ref, bepr_ref)  # f32

    # MLP layer 0: concat([x_typ, x_fp, x_prop]) @ W0 as a split-weight matmul
    # (the typ slice of W0 is already folded into embw0; no in-kernel concat).
    h = h + jnp.dot(x_fp.astype(cdt), w0fp_ref[...],
                    preferred_element_type=jnp.float32)
    h = h + jnp.dot(x_pr.astype(cdt), w0pr_ref[...],
                    preferred_element_type=jnp.float32)
    h = _leaky_relu(h + b0_ref[...])

    # Hidden layer.
    h = jnp.dot(h.astype(cdt), w1_ref[...],
                preferred_element_type=jnp.float32) + b1_ref[...]
    h = _leaky_relu(h)

    # Output layer (no trailing activation).
    out_ref[...] = (
        jnp.dot(h.astype(cdt), w2_ref[...], preferred_element_type=jnp.float32)
        + b2_ref[...]
    ).astype(out_ref.dtype)


def _round_up(x, m):
    return (x + m - 1) // m * m


def _prepare_params(params, compute_dtype):
    """Cast weights for the MXU and fold the embedding table through W0[:n_hid]."""
    n_hid = params["emb"].shape[1]
    f32 = jnp.float32
    cd = compute_dtype
    w0 = params["w0"].astype(f32)
    embw0 = jnp.dot(params["emb"].astype(f32), w0[:n_hid, :],
                    precision=jax.lax.Precision.HIGHEST).astype(cd)
    return dict(
        embw0=embw0,
        w_fp=params["w_fp"].astype(cd), b_fp=params["b_fp"].astype(f32),
        g_fp=params["g_fp"].astype(f32), be_fp=params["be_fp"].astype(f32),
        w_pr=params["w_pr"].astype(cd), b_pr=params["b_pr"].astype(f32),
        g_pr=params["g_pr"].astype(f32), be_pr=params["be_pr"].astype(f32),
        w0_fp=w0[n_hid:2 * n_hid, :].astype(cd),
        w0_pr=w0[2 * n_hid:3 * n_hid, :].astype(cd),
        b0=params["b0"].astype(f32),
        w1=params["w1"].astype(cd), b1=params["b1"].astype(f32),
        w2=params["w2"].astype(cd), b2=params["b2"].astype(f32),
    )


_WEIGHT_ORDER = ("embw0",
                 "w_fp", "b_fp", "g_fp", "be_fp",
                 "w_pr", "b_pr", "g_pr", "be_pr",
                 "w0_fp", "w0_pr", "b0",
                 "w1", "b1",
                 "w2", "b2")


def block_embedding_forward(typ, prop, fp, params, *, tile_n=512,
                            compute_dtype=jnp.bfloat16):
    """typ: (N,) int, prop: (N, prop_dim), fp: (N, fp_dim)."""
    N = typ.shape[0]
    prop_dim = prop.shape[1]
    fp_dim = fp.shape[1]
    n_out = params["w2"].shape[1]

    p = _prepare_params(params, compute_dtype)
    weights = tuple(p[k] for k in _WEIGHT_ORDER)

    # Batch tile: multiple of 8 (f32 sublane granule); pad N to a whole number
    # of tiles. Padded rows (typ=0, zero features) are computed and discarded.
    tile = _round_up(min(tile_n, N), 8)
    n_pad = _round_up(N, tile)
    pad = n_pad - N

    typ_p = typ.astype(jnp.int32).reshape(N, 1)
    prop_p = prop.astype(compute_dtype)
    fp_p = fp.astype(compute_dtype)
    if pad:
        typ_p = jnp.pad(typ_p, ((0, pad), (0, 0)))
        prop_p = jnp.pad(prop_p, ((0, pad), (0, 0)))
        fp_p = jnp.pad(fp_p, ((0, pad), (0, 0)))

    grid = (n_pad // tile,)

    def tiled_spec(d):
        return pl.BlockSpec((tile, d), lambda i: (i, 0))

    def resident_spec(arr):                # constant block index -> VMEM-resident
        return pl.BlockSpec(arr.shape, lambda i: (0, 0))

    in_specs = ([tiled_spec(1), tiled_spec(prop_dim), tiled_spec(fp_dim)]
                + [resident_spec(w) for w in weights])

    # VMEM budget: 2x double-buffered streaming tiles + resident weights,
    # with margin; capped so it also fits v7x's 64 MiB physical VMEM.
    act_itemsize = jnp.dtype(compute_dtype).itemsize
    stream_bytes = 2 * tile * (4 + act_itemsize * (prop_dim + fp_dim) + 4 * n_out)
    weight_bytes = sum(int(w.size) * w.dtype.itemsize for w in weights)
    vmem_limit = int(min(48 * 2**20,
                         max(16 * 2**20, 4 * (stream_bytes + weight_bytes))))

    out = pl.pallas_call(
        block_embedding_kernel,
        out_shape=jax.ShapeDtypeStruct((n_pad, n_out), jnp.float32),
        grid=grid,
        in_specs=in_specs,
        out_specs=tiled_spec(n_out),
        compiler_params=pltpu.CompilerParams(
            dimension_semantics=("parallel",),   # batch tiles are independent
            vmem_limit_bytes=vmem_limit,
        ),
    )(typ_p, prop_p, fp_p, *weights)
    return out[:N]


def make_params(key, fp_dim, prop_dim, n_type, n_hid, n_out):
    ks = jax.random.split(key, 8)
    scale = 0.1
    return {
        "emb": jax.random.normal(ks[0], (n_type, n_hid), jnp.float32) * scale,
        "w_fp": jax.random.normal(ks[1], (fp_dim, n_hid), jnp.float32) * scale,
        "b_fp": jnp.zeros((1, n_hid), jnp.float32),
        "g_fp": jnp.ones((1, n_hid), jnp.float32),
        "be_fp": jnp.zeros((1, n_hid), jnp.float32),
        "w_pr": jax.random.normal(ks[2], (prop_dim, n_hid), jnp.float32) * scale,
        "b_pr": jnp.zeros((1, n_hid), jnp.float32),
        "g_pr": jnp.ones((1, n_hid), jnp.float32),
        "be_pr": jnp.zeros((1, n_hid), jnp.float32),
        "w0": jax.random.normal(ks[3], (3 * n_hid, n_hid), jnp.float32) * scale,
        "b0": jax.random.normal(ks[4], (1, n_hid), jnp.float32) * scale,
        "w1": jax.random.normal(ks[5], (n_hid, n_hid), jnp.float32) * scale,
        "b1": jnp.zeros((1, n_hid), jnp.float32),
        "w2": jax.random.normal(ks[6], (n_hid, n_out), jnp.float32) * scale,
        "b2": jax.random.normal(ks[7], (1, n_out), jnp.float32) * scale,
    }


def reference_forward(typ, prop, fp, params):
    """Pure-JAX, full-f32 reference of the module semantics."""
    hp = jax.lax.Precision.HIGHEST
    mm = lambda a, b: jnp.dot(a, b, precision=hp)
    lrelu = lambda v: jnp.where(v > 0, v, 0.01 * v)

    def lin_ln_act(x, w, b, g, be):
        h = mm(x, w) + b
        mu = jnp.mean(h, axis=-1, keepdims=True)
        var = jnp.mean((h - mu) ** 2, axis=-1, keepdims=True)
        h = (h - mu) * jax.lax.rsqrt(var + 1e-5) * g + be
        return lrelu(h)

    x_typ = params["emb"][typ]
    x_fp = lin_ln_act(fp, params["w_fp"], params["b_fp"], params["g_fp"], params["be_fp"])
    x_pr = lin_ln_act(prop, params["w_pr"], params["b_pr"], params["g_pr"], params["be_pr"])
    x = jnp.concatenate([x_typ, x_fp, x_pr], axis=-1)
    h = lrelu(mm(x, params["w0"]) + params["b0"])
    h = lrelu(mm(h, params["w1"]) + params["b1"])
    return mm(h, params["w2"]) + params["b2"]


def matched_reference(typ, prop, fp, params, compute_dtype=jnp.bfloat16):
    """Pure-JAX replica of the kernel's exact arithmetic (same casts/folding),
    used for a tight regression check."""
    p = _prepare_params(params, compute_dtype)
    cd = compute_dtype
    lrelu = lambda v: jnp.where(v > 0, v, 0.01 * v)

    def dot(a, b):
        return jnp.dot(a.astype(cd), b, preferred_element_type=jnp.float32)

    def ln(h, g, be, eps=1e-5):
        mu = jnp.mean(h, axis=-1, keepdims=True)
        var = jnp.mean((h - mu) ** 2, axis=-1, keepdims=True)
        return (h - mu) * jax.lax.rsqrt(var + eps) * g + be

    x_fp = lrelu(ln(dot(fp, p["w_fp"]) + p["b_fp"], p["g_fp"], p["be_fp"]))
    x_pr = lrelu(ln(dot(prop, p["w_pr"]) + p["b_pr"], p["g_pr"], p["be_pr"]))
    h = p["embw0"][typ].astype(jnp.float32)
    h = h + dot(x_fp, p["w0_fp"]) + dot(x_pr, p["w0_pr"])
    h = lrelu(h + p["b0"])
    h = lrelu(dot(h, p["w1"]) + p["b1"])
    return dot(h, p["w2"]) + p["b2"]


if __name__ == "__main__":
    # Small shapes consistent with the module:
    #   N blocks, fp_dim=64, prop_dim=8, n_type=4, n_hid=32, n_out=16, n_layers=2
    N, fp_dim, prop_dim, n_type, n_hid, n_out = 8, 64, 8, 4, 32, 16

    key = jax.random.PRNGKey(0)
    k_typ, k_prop, k_fp, k_par = jax.random.split(key, 4)

    typ = jax.random.randint(k_typ, (N,), 0, n_type, dtype=jnp.int32)
    prop = jax.random.normal(k_prop, (N, prop_dim), jnp.float32)
    fp = (jax.random.uniform(k_fp, (N, fp_dim)) > 0.5).astype(jnp.float32)

    params = make_params(k_par, fp_dim, prop_dim, n_type, n_hid, n_out)

    out = block_embedding_forward(typ, prop, fp, params)  # bf16 streaming path
    out = jax.block_until_ready(out)
    assert out.shape == (N, n_out), out.shape

    # Tight check against a reference that applies the identical bf16 casting.
    ref_match = matched_reference(typ, prop, fp, params)
    err_match = float(jnp.max(jnp.abs(out - ref_match)))
    assert jnp.allclose(out, ref_match, rtol=1e-4, atol=1e-4), err_match

    # Loose check against the full-f32 module semantics (bf16 cast error only).
    ref_f32 = reference_forward(typ, prop, fp, params)
    err_f32 = float(jnp.max(jnp.abs(out - ref_f32)))
    assert jnp.allclose(out, ref_f32, rtol=2e-2, atol=2e-2), err_f32

    print("KERNEL_OK")
</pallas_src>

<mosaic_0001>
module attributes {stable_mosaic.version = 11 : i64} {
  func.func @block_embedding_kernel(%arg0: i32, %arg1: memref<8x1xi32, #tpu.memory_space<vmem>>, %arg2: memref<8x8xbf16, #tpu.memory_space<vmem>>, %arg3: memref<8x64xbf16, #tpu.memory_space<vmem>>, %arg4: memref<4x32xbf16, #tpu.memory_space<vmem>>, %arg5: memref<64x32xbf16, #tpu.memory_space<vmem>>, %arg6: memref<1x32xf32, #tpu.memory_space<vmem>>, %arg7: memref<1x32xf32, #tpu.memory_space<vmem>>, %arg8: memref<1x32xf32, #tpu.memory_space<vmem>>, %arg9: memref<8x32xbf16, #tpu.memory_space<vmem>>, %arg10: memref<1x32xf32, #tpu.memory_space<vmem>>, %arg11: memref<1x32xf32, #tpu.memory_space<vmem>>, %arg12: memref<1x32xf32, #tpu.memory_space<vmem>>, %arg13: memref<32x32xbf16, #tpu.memory_space<vmem>>, %arg14: memref<32x32xbf16, #tpu.memory_space<vmem>>, %arg15: memref<1x32xf32, #tpu.memory_space<vmem>>, %arg16: memref<32x32xbf16, #tpu.memory_space<vmem>>, %arg17: memref<1x32xf32, #tpu.memory_space<vmem>>, %arg18: memref<32x16xbf16, #tpu.memory_space<vmem>>, %arg19: memref<1x16xf32, #tpu.memory_space<vmem>>, %arg20: memref<8x16xf32, #tpu.memory_space<vmem>>) attributes {dimension_semantics = [#tpu.dimension_semantics<parallel>], iteration_bounds = array<i64: 1>, scalar_prefetch = 0 : i64, scratch_operands = 0 : i64, tpu.core_type = #tpu.core_type<tc>, window_params = [{transform_indices = @transform_0, window_bounds = array<i64: 8, 1>}, {transform_indices = @transform_1, window_bounds = array<i64: 8, 8>}, {transform_indices = @transform_2, window_bounds = array<i64: 8, 64>}, {pipeline_mode = #tpu.pipeline_mode<synchronous>, transform_indices = @transform_3, window_bounds = array<i64: 4, 32>}, {pipeline_mode = #tpu.pipeline_mode<synchronous>, transform_indices = @transform_4, window_bounds = array<i64: 64, 32>}, {pipeline_mode = #tpu.pipeline_mode<synchronous>, transform_indices = @transform_5, window_bounds = array<i64: 1, 32>}, {pipeline_mode = #tpu.pipeline_mode<synchronous>, transform_indices = @transform_6, window_bounds = array<i64: 1, 32>}, {pipeline_mode = #tpu.pipeline_mode<synchronous>, transform_indices = @transform_7, window_bounds = array<i64: 1, 32>}, {pipeline_mode = #tpu.pipeline_mode<synchronous>, transform_indices = @transform_8, window_bounds = array<i64: 8, 32>}, {pipeline_mode = #tpu.pipeline_mode<synchronous>, transform_indices = @transform_9, window_bounds = array<i64: 1, 32>}, {pipeline_mode = #tpu.pipeline_mode<synchronous>, transform_indices = @transform_10, window_bounds = array<i64: 1, 32>}, {pipeline_mode = #tpu.pipeline_mode<synchronous>, transform_indices = @transform_11, window_bounds = array<i64: 1, 32>}, {pipeline_mode = #tpu.pipeline_mode<synchronous>, transform_indices = @transform_12, window_bounds = array<i64: 32, 32>}, {pipeline_mode = #tpu.pipeline_mode<synchronous>, transform_indices = @transform_13, window_bounds = array<i64: 32, 32>}, {pipeline_mode = #tpu.pipeline_mode<synchronous>, transform_indices = @transform_14, window_bounds = array<i64: 1, 32>}, {pipeline_mode = #tpu.pipeline_mode<synchronous>, transform_indices = @transform_15, window_bounds = array<i64: 32, 32>}, {pipeline_mode = #tpu.pipeline_mode<synchronous>, transform_indices = @transform_16, window_bounds = array<i64: 1, 32>}, {pipeline_mode = #tpu.pipeline_mode<synchronous>, transform_indices = @transform_17, window_bounds = array<i64: 32, 16>}, {pipeline_mode = #tpu.pipeline_mode<synchronous>, transform_indices = @transform_18, window_bounds = array<i64: 1, 16>}, {transform_indices = @transform_19, window_bounds = array<i64: 8, 16>}]} {
    %c0 = arith.constant 0 : index
    %c0_0 = arith.constant 0 : index
    %0 = vector.load %arg1[%c0, %c0_0] : memref<8x1xi32, #tpu.memory_space<vmem>>, vector<8x1xi32>
    %1 = tpu.iota {dimensions = array<i32: 1>} : vector<8x4xi32>
    %2 = vector.broadcast %0 : vector<8x1xi32> to vector<8x4xi32>
    %3 = arith.cmpi eq, %1, %2 : vector<8x4xi32>
    %4 = arith.extui %3 : vector<8x4xi1> to vector<8x4xi32>
    %5 = arith.sitofp %4 : vector<8x4xi32> to vector<8x4xf32>
    %6 = arith.truncf %5 : vector<8x4xf32> to vector<8x4xbf16>
    %c0_1 = arith.constant 0 : index
    %c0_2 = arith.constant 0 : index
    %7 = vector.load %arg4[%c0_1, %c0_2] : memref<4x32xbf16, #tpu.memory_space<vmem>>, vector<4x32xbf16>
    %cst = arith.constant dense<0.000000e+00> : vector<8x32xf32>
    %8 = tpu.matmul %6, %7, %cst {dimension_numbers = #tpu.dot_dimension_numbers<[1], [0], [0], [1], [0, 0, 1, 1], [], []>} : vector<8x4xbf16>, vector<4x32xbf16>, vector<8x32xf32> -> vector<8x32xf32>
    %c0_3 = arith.constant 0 : index
    %c0_4 = arith.constant 0 : index
    %9 = vector.load %arg3[%c0_3, %c0_4] : memref<8x64xbf16, #tpu.memory_space<vmem>>, vector<8x64xbf16>
    %c0_5 = arith.constant 0 : index
    %c0_6 = arith.constant 0 : index
    %10 = vector.load %arg5[%c0_5, %c0_6] : memref<64x32xbf16, #tpu.memory_space<vmem>>, vector<64x32xbf16>
    %cst_7 = arith.constant dense<0.000000e+00> : vector<8x32xf32>
    %11 = tpu.matmul %9, %10, %cst_7 {dimension_numbers = #tpu.dot_dimension_numbers<[1], [0], [0], [1], [0, 0, 1, 1], [], []>} : vector<8x64xbf16>, vector<64x32xbf16>, vector<8x32xf32> -> vector<8x32xf32>
    %c0_8 = arith.constant 0 : index
    %c0_9 = arith.constant 0 : index
    %12 = vector.load %arg6[%c0_8, %c0_9] : memref<1x32xf32, #tpu.memory_space<vmem>>, vector<1x32xf32>
    %13 = vector.broadcast %12 : vector<1x32xf32> to vector<8x32xf32>
    %14 = arith.addf %11, %13 : vector<8x32xf32>
    %c0_10 = arith.constant 0 : index
    %c0_11 = arith.constant 0 : index
    %15 = vector.load %arg7[%c0_10, %c0_11] : memref<1x32xf32, #tpu.memory_space<vmem>>, vector<1x32xf32>
    %c0_12 = arith.constant 0 : index
    %c0_13 = arith.constant 0 : index
    %16 = vector.load %arg8[%c0_12, %c0_13] : memref<1x32xf32, #tpu.memory_space<vmem>>, vector<1x32xf32>
    %cst_14 = arith.constant dense<0.000000e+00> : vector<8xf32>
    %17 = vector.multi_reduction <add>, %14, %cst_14 [1] : vector<8x32xf32> to vector<8xf32>
    %18 = vector.shape_cast %17 : vector<8xf32> to vector<8x1xf32>
    %cst_15 = arith.constant 3.200000e+01 : f32
    %19 = vector.broadcast %cst_15 : f32 to vector<8x1xf32>
    %20 = arith.divf %18, %19 : vector<8x1xf32>
    %21 = vector.broadcast %20 : vector<8x1xf32> to vector<8x32xf32>
    %22 = arith.subf %14, %21 : vector<8x32xf32>
    %23 = vector.broadcast %20 : vector<8x1xf32> to vector<8x32xf32>
    %24 = arith.subf %14, %23 : vector<8x32xf32>
    %25 = arith.mulf %22, %24 : vector<8x32xf32>
    %cst_16 = arith.constant dense<0.000000e+00> : vector<8xf32>
    %26 = vector.multi_reduction <add>, %25, %cst_16 [1] : vector<8x32xf32> to vector<8xf32>
    %27 = vector.shape_cast %26 : vector<8xf32> to vector<8x1xf32>
    %cst_17 = arith.constant 3.200000e+01 : f32
    %28 = vector.broadcast %cst_17 : f32 to vector<8x1xf32>
    %29 = arith.divf %27, %28 : vector<8x1xf32>
    %30 = vector.broadcast %20 : vector<8x1xf32> to vector<8x32xf32>
    %31 = arith.subf %14, %30 : vector<8x32xf32>
    %cst_18 = arith.constant 9.99999974E-6 : f32
    %32 = vector.broadcast %cst_18 : f32 to vector<8x1xf32>
    %33 = arith.addf %29, %32 : vector<8x1xf32>
    %34 = math.rsqrt %33 : vector<8x1xf32>
    %35 = vector.broadcast %34 : vector<8x1xf32> to vector<8x32xf32>
    %36 = arith.mulf %31, %35 : vector<8x32xf32>
    %37 = vector.broadcast %15 : vector<1x32xf32> to vector<8x32xf32>
    %38 = arith.mulf %36, %37 : vector<8x32xf32>
    %39 = vector.broadcast %16 : vector<1x32xf32> to vector<8x32xf32>
    %40 = arith.addf %38, %39 : vector<8x32xf32>
    %cst_19 = arith.constant 0.000000e+00 : f32
    %41 = vector.broadcast %cst_19 : f32 to vector<8x32xf32>
    %42 = arith.cmpf ogt, %40, %41 : vector<8x32xf32>
    %cst_20 = arith.constant 0.00999999977 : f32
    %43 = vector.broadcast %cst_20 : f32 to vector<8x32xf32>
    %44 = arith.mulf %43, %40 : vector<8x32xf32>
    %45 = arith.select %42, %40, %44 : vector<8x32xi1>, vector<8x32xf32>
    %c0_21 = arith.constant 0 : index
    %c0_22 = arith.constant 0 : index
    %46 = vector.load %arg2[%c0_21, %c0_22] : memref<8x8xbf16, #tpu.memory_space<vmem>>, vector<8x8xbf16>
    %c0_23 = arith.constant 0 : index
    %c0_24 = arith.constant 0 : index
    %47 = vector.load %arg9[%c0_23, %c0_24] : memref<8x32xbf16, #tpu.memory_space<vmem>>, vector<8x32xbf16>
    %cst_25 = arith.constant dense<0.000000e+00> : vector<8x32xf32>
    %48 = tpu.matmul %46, %47, %cst_25 {dimension_numbers = #tpu.dot_dimension_numbers<[1], [0], [0], [1], [0, 0, 1, 1], [], []>} : vector<8x8xbf16>, vector<8x32xbf16>, vector<8x32xf32> -> vector<8x32xf32>
    %c0_26 = arith.constant 0 : index
    %c0_27 = arith.constant 0 : index
    %49 = vector.load %arg10[%c0_26, %c0_27] : memref<1x32xf32, #tpu.memory_space<vmem>>, vector<1x32xf32>
    %50 = vector.broadcast %49 : vector<1x32xf32> to vector<8x32xf32>
    %51 = arith.addf %48, %50 : vector<8x32xf32>
    %c0_28 = arith.constant 0 : index
    %c0_29 = arith.constant 0 : index
    %52 = vector.load %arg11[%c0_28, %c0_29] : memref<1x32xf32, #tpu.memory_space<vmem>>, vector<1x32xf32>
    %c0_30 = arith.constant 0 : index
    %c0_31 = arith.constant 0 : index
    %53 = vector.load %arg12[%c0_30, %c0_31] : memref<1x32xf32, #tpu.memory_space<vmem>>, vector<1x32xf32>
    %cst_32 = arith.constant dense<0.000000e+00> : vector<8xf32>
    %54 = vector.multi_reduction <add>, %51, %cst_32 [1] : vector<8x32xf32> to vector<8xf32>
    %55 = vector.shape_cast %54 : vector<8xf32> to vector<8x1xf32>
    %cst_33 = arith.constant 3.200000e+01 : f32
    %56 = vector.broadcast %cst_33 : f32 to vector<8x1xf32>
    %57 = arith.divf %55, %56 : vector<8x1xf32>
    %58 = vector.broadcast %57 : vector<8x1xf32> to vector<8x32xf32>
    %59 = arith.subf %51, %58 : vector<8x32xf32>
    %60 = vector.broadcast %57 : vector<8x1xf32> to vector<8x32xf32>
    %61 = arith.subf %51, %60 : vector<8x32xf32>
    %62 = arith.mulf %59, %61 : vector<8x32xf32>
    %cst_34 = arith.constant dense<0.000000e+00> : vector<8xf32>
    %63 = vector.multi_reduction <add>, %62, %cst_34 [1] : vector<8x32xf32> to vector<8xf32>
    %64 = vector.shape_cast %63 : vector<8xf32> to vector<8x1xf32>
    %cst_35 = arith.constant 3.200000e+01 : f32
    %65 = vector.broadcast %cst_35 : f32 to vector<8x1xf32>
    %66 = arith.divf %64, %65 : vector<8x1xf32>
    %67 = vector.broadcast %57 : vector<8x1xf32> to vector<8x32xf32>
    %68 = arith.subf %51, %67 : vector<8x32xf32>
    %cst_36 = arith.constant 9.99999974E-6 : f32
    %69 = vector.broadcast %cst_36 : f32 to vector<8x1xf32>
    %70 = arith.addf %66, %69 : vector<8x1xf32>
    %71 = math.rsqrt %70 : vector<8x1xf32>
    %72 = vector.broadcast %71 : vector<8x1xf32> to vector<8x32xf32>
    %73 = arith.mulf %68, %72 : vector<8x32xf32>
    %74 = vector.broadcast %52 : vector<1x32xf32> to vector<8x32xf32>
    %75 = arith.mulf %73, %74 : vector<8x32xf32>
    %76 = vector.broadcast %53 : vector<1x32xf32> to vector<8x32xf32>
    %77 = arith.addf %75, %76 : vector<8x32xf32>
    %cst_37 = arith.constant 0.000000e+00 : f32
    %78 = vector.broadcast %cst_37 : f32 to vector<8x32xf32>
    %79 = arith.cmpf ogt, %77, %78 : vector<8x32xf32>
    %cst_38 = arith.constant 0.00999999977 : f32
    %80 = vector.broadcast %cst_38 : f32 to vector<8x32xf32>
    %81 = arith.mulf %80, %77 : vector<8x32xf32>
    %82 = arith.select %79, %77, %81 : vector<8x32xi1>, vector<8x32xf32>
    %83 = arith.truncf %45 : vector<8x32xf32> to vector<8x32xbf16>
    %c0_39 = arith.constant 0 : index
    %c0_40 = arith.constant 0 : index
    %84 = vector.load %arg13[%c0_39, %c0_40] : memref<32x32xbf16, #tpu.memory_space<vmem>>, vector<32x32xbf16>
    %cst_41 = arith.constant dense<0.000000e+00> : vector<8x32xf32>
    %85 = tpu.matmul %83, %84, %cst_41 {dimension_numbers = #tpu.dot_dimension_numbers<[1], [0], [0], [1], [0, 0, 1, 1], [], []>} : vector<8x32xbf16>, vector<32x32xbf16>, vector<8x32xf32> -> vector<8x32xf32>
    %86 = arith.addf %8, %85 : vector<8x32xf32>
    %87 = arith.truncf %82 : vector<8x32xf32> to vector<8x32xbf16>
    %c0_42 = arith.constant 0 : index
    %c0_43 = arith.constant 0 : index
    %88 = vector.load %arg14[%c0_42, %c0_43] : memref<32x32xbf16, #tpu.memory_space<vmem>>, vector<32x32xbf16>
    %cst_44 = arith.constant dense<0.000000e+00> : vector<8x32xf32>
    %89 = tpu.matmul %87, %88, %cst_44 {dimension_numbers = #tpu.dot_dimension_numbers<[1], [0], [0], [1], [0, 0, 1, 1], [], []>} : vector<8x32xbf16>, vector<32x32xbf16>, vector<8x32xf32> -> vector<8x32xf32>
    %90 = arith.addf %86, %89 : vector<8x32xf32>
    %c0_45 = arith.constant 0 : index
    %c0_46 = arith.constant 0 : index
    %91 = vector.load %arg15[%c0_45, %c0_46] : memref<1x32xf32, #tpu.memory_space<vmem>>, vector<1x32xf32>
    %92 = vector.broadcast %91 : vector<1x32xf32> to vector<8x32xf32>
    %93 = arith.addf %90, %92 : vector<8x32xf32>
    %cst_47 = arith.constant 0.000000e+00 : f32
    %94 = vector.broadcast %cst_47 : f32 to vector<8x32xf32>
    %95 = arith.cmpf ogt, %93, %94 : vector<8x32xf32>
    %cst_48 = arith.constant 0.00999999977 : f32
    %96 = vector.broadcast %cst_48 : f32 to vector<8x32xf32>
    %97 = arith.mulf %96, %93 : vector<8x32xf32>
    %98 = arith.select %95, %93, %97 : vector<8x32xi1>, vector<8x32xf32>
    %99 = arith.truncf %98 : vector<8x32xf32> to vector<8x32xbf16>
    %c0_49 = arith.constant 0 : index
    %c0_50 = arith.constant 0 : index
    %100 = vector.load %arg16[%c0_49, %c0_50] : memref<32x32xbf16, #tpu.memory_space<vmem>>, vector<32x32xbf16>
    %cst_51 = arith.constant dense<0.000000e+00> : vector<8x32xf32>
    %101 = tpu.matmul %99, %100, %cst_51 {dimension_numbers = #tpu.dot_dimension_numbers<[1], [0], [0], [1], [0, 0, 1, 1], [], []>} : vector<8x32xbf16>, vector<32x32xbf16>, vector<8x32xf32> -> vector<8x32xf32>
    %c0_52 = arith.constant 0 : index
    %c0_53 = arith.constant 0 : index
    %102 = vector.load %arg17[%c0_52, %c0_53] : memref<1x32xf32, #tpu.memory_space<vmem>>, vector<1x32xf32>
    %103 = vector.broadcast %102 : vector<1x32xf32> to vector<8x32xf32>
    %104 = arith.addf %101, %103 : vector<8x32xf32>
    %cst_54 = arith.constant 0.000000e+00 : f32
    %105 = vector.broadcast %cst_54 : f32 to vector<8x32xf32>
    %106 = arith.cmpf ogt, %104, %105 : vector<8x32xf32>
    %cst_55 = arith.constant 0.00999999977 : f32
    %107 = vector.broadcast %cst_55 : f32 to vector<8x32xf32>
    %108 = arith.mulf %107, %104 : vector<8x32xf32>
    %109 = arith.select %106, %104, %108 : vector<8x32xi1>, vector<8x32xf32>
    %110 = arith.truncf %109 : vector<8x32xf32> to vector<8x32xbf16>
    %c0_56 = arith.constant 0 : index
    %c0_57 = arith.constant 0 : index
    %111 = vector.load %arg18[%c0_56, %c0_57] : memref<32x16xbf16, #tpu.memory_space<vmem>>, vector<32x16xbf16>
    %cst_58 = arith.constant dense<0.000000e+00> : vector<8x16xf32>
    %112 = tpu.matmul %110, %111, %cst_58 {dimension_numbers = #tpu.dot_dimension_numbers<[1], [0], [0], [1], [0, 0, 1, 1], [], []>} : vector<8x32xbf16>, vector<32x16xbf16>, vector<8x16xf32> -> vector<8x16xf32>
    %c0_59 = arith.constant 0 : index
    %c0_60 = arith.constant 0 : index
    %113 = vector.load %arg19[%c0_59, %c0_60] : memref<1x16xf32, #tpu.memory_space<vmem>>, vector<1x16xf32>
    %114 = vector.broadcast %113 : vector<1x16xf32> to vector<8x16xf32>
    %115 = arith.addf %112, %114 : vector<8x16xf32>
    %c0_61 = arith.constant 0 : index
    %c0_62 = arith.constant 0 : index
    %116 = vector.load %arg20[%c0_61, %c0_62] : memref<8x16xf32, #tpu.memory_space<vmem>>, vector<8x16xf32>
    tpu.vector_store %arg20[%c0_61, %c0_62], %115 {strides = array<i32>} : memref<8x16xf32, #tpu.memory_space<vmem>>, vector<8x16xf32>,
    return
  }
  func.func @transform_0(%arg0: i32) -> (i32, i32) {
    %c0_i32 = arith.constant 0 : i32
    %c0_i32_0 = arith.constant 0 : i32
    return %arg0, %c0_i32 : i32, i32
  }
  func.func @transform_1(%arg0: i32) -> (i32, i32) {
    %c0_i32 = arith.constant 0 : i32
    %c0_i32_0 = arith.constant 0 : i32
    return %arg0, %c0_i32 : i32, i32
  }
  func.func @transform_2(%arg0: i32) -> (i32, i32) {
    %c0_i32 = arith.constant 0 : i32
    %c0_i32_0 = arith.constant 0 : i32
    return %arg0, %c0_i32 : i32, i32
  }
  func.func @transform_3(%arg0: i32) -> (i32, i32) {
    %c0_i32 = arith.constant 0 : i32
    %c0_i32_0 = arith.constant 0 : i32
    %c0_i32_1 = arith.constant 0 : i32
    return %c0_i32, %c0_i32_0 : i32, i32
  }
  func.func @transform_4(%arg0: i32) -> (i32, i32) {
    %c0_i32 = arith.constant 0 : i32
    %c0_i32_0 = arith.constant 0 : i32
    %c0_i32_1 = arith.constant 0 : i32
    return %c0_i32, %c0_i32_0 : i32, i32
  }
  func.func @transform_5(%arg0: i32) -> (i32, i32) {
    %c0_i32 = arith.constant 0 : i32
    %c0_i32_0 = arith.constant 0 : i32
    %c0_i32_1 = arith.constant 0 : i32
    return %c0_i32, %c0_i32_0 : i32, i32
  }
  func.func @transform_6(%arg0: i32) -> (i32, i32) {
    %c0_i32 = arith.constant 0 : i32
    %c0_i32_0 = arith.constant 0 : i32
    %c0_i32_1 = arith.constant 0 : i32
    return %c0_i32, %c0_i32_0 : i32, i32
  }
  func.func @transform_7(%arg0: i32) -> (i32, i32) {
    %c0_i32 = arith.constant 0 : i32
    %c0_i32_0 = arith.constant 0 : i32
    %c0_i32_1 = arith.constant 0 : i32
    return %c0_i32, %c0_i32_0 : i32, i32
  }
  func.func @transform_8(%arg0: i32) -> (i32, i32) {
    %c0_i32 = arith.constant 0 : i32
    %c0_i32_0 = arith.constant 0 : i32
    %c0_i32_1 = arith.constant 0 : i32
    return %c0_i32, %c0_i32_0 : i32, i32
  }
  func.func @transform_9(%arg0: i32) -> (i32, i32) {
    %c0_i32 = arith.constant 0 : i32
    %c0_i32_0 = arith.constant 0 : i32
    %c0_i32_1 = arith.constant 0 : i32
    return %c0_i32, %c0_i32_0 : i32, i32
  }
  func.func @transform_10(%arg0: i32) -> (i32, i32) {
    %c0_i32 = arith.constant 0 : i32
    %c0_i32_0 = arith.constant 0 : i32
    %c0_i32_1 = arith.constant 0 : i32
    return %c0_i32, %c0_i32_0 : i32, i32
  }
  func.func @transform_11(%arg0: i32) -> (i32, i32) {
    %c0_i32 = arith.constant 0 : i32
    %c0_i32_0 = arith.constant 0 : i32
    %c0_i32_1 = arith.constant 0 : i32
    return %c0_i32, %c0_i32_0 : i32, i32
  }
  func.func @transform_12(%arg0: i32) -> (i32, i32) {
    %c0_i32 = arith.constant 0 : i32
    %c0_i32_0 = arith.constant 0 : i32
    %c0_i32_1 = arith.constant 0 : i32
    return %c0_i32, %c0_i32_0 : i32, i32
  }
  func.func @transform_13(%arg0: i32) -> (i32, i32) {
    %c0_i32 = arith.constant 0 : i32
    %c0_i32_0 = arith.constant 0 : i32
    %c0_i32_1 = arith.constant 0 : i32
    return %c0_i32, %c0_i32_0 : i32, i32
  }
  func.func @transform_14(%arg0: i32) -> (i32, i32) {
    %c0_i32 = arith.constant 0 : i32
    %c0_i32_0 = arith.constant 0 : i32
    %c0_i32_1 = arith.constant 0 : i32
    return %c0_i32, %c0_i32_0 : i32, i32
  }
  func.func @transform_15(%arg0: i32) -> (i32, i32) {
    %c0_i32 = arith.constant 0 : i32
    %c0_i32_0 = arith.constant 0 : i32
    %c0_i32_1 = arith.constant 0 : i32
    return %c0_i32, %c0_i32_0 : i32, i32
  }
  func.func @transform_16(%arg0: i32) -> (i32, i32) {
    %c0_i32 = arith.constant 0 : i32
    %c0_i32_0 = arith.constant 0 : i32
    %c0_i32_1 = arith.constant 0 : i32
    return %c0_i32, %c0_i32_0 : i32, i32
  }
  func.func @transform_17(%arg0: i32) -> (i32, i32) {
    %c0_i32 = arith.constant 0 : i32
    %c0_i32_0 = arith.constant 0 : i32
    %c0_i32_1 = arith.constant 0 : i32
    return %c0_i32, %c0_i32_0 : i32, i32
  }
  func.func @transform_18(%arg0: i32) -> (i32, i32) {
    %c0_i32 = arith.constant 0 : i32
    %c0_i32_0 = arith.constant 0 : i32
    %c0_i32_1 = arith.constant 0 : i32
    return %c0_i32, %c0_i32_0 : i32, i32
  }
  func.func @transform_19(%arg0: i32) -> (i32, i32) {
    %c0_i32 = arith.constant 0 : i32
    %c0_i32_0 = arith.constant 0 : i32
    return %arg0, %c0_i32 : i32, i32
  }
}

</mosaic_0001>

<bundles_post_ra>
// kernel: tpu_custom_call.1
= control target key start
LH: loop header
LB: loop body
LE: loop exit
PB: predicated region body
PF: predicated region fallthrough
CT: control target
= control target key end

     0   :  { %s986_s0 = inlined_call_operand.vmem [shape: s32[8,1], index: 0, kind: input, shape index: {}]   ;;  %s987_s1 = inlined_call_operand.vmem [shape: bf16[8,8], index: 1, kind: input, shape index: {}]   ;;  %s988_s2 = inlined_call_operand.vmem [shape: bf16[8,64], index: 2, kind: input, shape index: {}]   ;;  %s989_s3 = inlined_call_operand.vmem [shape: bf16[4,32], index: 3, kind: input, shape index: {}]   ;;  %s990_s4 = inlined_call_operand.vmem [shape: bf16[64,32], index: 4, kind: input, shape index: {}]   ;;  %s991_s5 = inlined_call_operand.vmem [shape: f32[1,32], index: 5, kind: input, shape index: {}]   ;;  %s992_s6 = inlined_call_operand.vmem [shape: f32[1,32], index: 6, kind: input, shape index: {}]   ;;  %s993_s7 = inlined_call_operand.vmem [shape: f32[1,32], index: 7, kind: input, shape index: {}]   ;;  %s994_s8 = inlined_call_operand.vmem [shape: bf16[8,32], index: 8, kind: input, shape index: {}]   ;;  %s995_s9 = inlined_call_operand.vmem [shape: f32[1,32], index: 9, kind: input, shape index: {}]   ;;  %s996_s10 = inlined_call_operand.vmem [shape: f32[1,32], index: 10, kind: input, shape index: {}]   ;;  %s997_s11 = inlined_call_operand.vmem [shape: f32[1,32], index: 11, kind: input, shape index: {}]   ;;  %s998_s12 = inlined_call_operand.vmem [shape: bf16[32,32], index: 12, kind: input, shape index: {}]   ;;  %s999_s13 = inlined_call_operand.vmem [shape: bf16[32,32], index: 13, kind: input, shape index: {}]   ;;  %s1000_s14 = inlined_call_operand.vmem [shape: f32[1,32], index: 14, kind: input, shape index: {}]   ;;  %s1001_s15 = inlined_call_operand.vmem [shape: bf16[32,32], index: 15, kind: input, shape index: {}]   ;;  %s1002_s16 = inlined_call_operand.vmem [shape: f32[1,32], index: 16, kind: input, shape index: {}]   ;;  %s1003_s17 = inlined_call_operand.vmem [shape: bf16[32,16], index: 17, kind: input, shape index: {}]   ;;  %s1004_s18 = inlined_call_operand.vmem [shape: f32[1,16], index: 18, kind: input, shape index: {}]   ;;  %s1005_s19 = inlined_call_operand.hbm [shape: f32[8,16], index: 19, kind: output, shape index: {}]  }
   0x1   :  { %1006 = sst [smem:[#allocation5_spill]] %s986_s0 }
   0x2   :  { %1007 = sst [smem:[#allocation6_spill]] %s987_s1 }
   0x3   :  { %1008 = sst [smem:[#allocation7_spill]] %s988_s2 }
   0x4   :  { %1009 = sst [smem:[#allocation8_spill]] %s989_s3 }
   0x5   :  { %v726_v0 = vld [vmem:[%s990_s4 + $0x18] sm:$0xff]   ;;  %v764_v1 = vmov 0.0   ;;  %v727_v2 = vld [vmem:[%s990_s4 + $0x10] sm:$0xff]   ;;  %vm765_vm0 = vmmov 0   ;;  %vm206_vm1 = vcmask 1043456   ;;  %v728_v3 = vld [vmem:[%s990_s4 + $0x8] sm:$0xff]  }
   0x6   :  { %665 = vmatprep.subr.bf16.mxu0 %v764_v1  ;;  %677 = vmatprep.subr.bf16.mxu1 %v764_v1  ;;  %v194_v4 = vld [vmem:[%s994_s8] sm:$0xf]  ;;  %s1010_s3 = sld [smem:[#allocation6_spill]]  ;;  %vm202_vm2 = vcmask 64512  }
   0x7   :  { %666 = vmatpush3.bf16.msra.mxu0 %v726_v0  ;;  %673 = vmatprep.mubr.msk.bf16.mxu0 %vm765_vm0, %v764_v1  ;;  %v208_v5 = vsel %vm206_vm1, %v194_v4, 0  ;;  %v729_v7 = vld [vmem:[%s990_s4] sm:$0xff]  }
   0x8   :  { %667 = vmatprep.subr.bf16.mxu0 %v764_v1  ;;  %679 = vmatprep.mubr.msk.bf16.mxu1 %vm765_vm0, %v764_v1 }
   0x9   :  { %678 = vmatpush3.bf16.msra.mxu1 %v208_v5 }
   0xa   :  { %683 = vmatprep.subr.bf16.mxu1 %v764_v1 }
   0xb   :  { %668 = vmatpush3.bf16.msra.mxu0 %v727_v2 }
   0xc   :  { %v193_v6 = vld [vmem:[%s1010_s3] sm:$0xf]  ;;  %669 = vmatprep.subr.bf16.mxu0 %v764_v1 }
   0xd   :  { %680 = vmatmul.mubr.msk.bf16.vlgmr.msra.gmra.mxu1 %vm202_vm2, %v193_v6 }
   0xe   :  { %687 = vmatprep.mubr.msk.bf16.mxu1 %vm765_vm0, %v764_v1 }
   0xf   :  { %670 = vmatpush3.bf16.msra.mxu0 %v728_v3 }
  0x10   :  { %671 = vmatprep.subr.bf16.mxu0 %v764_v1 }
  0x11   :  { %24 = vsyncpa [#allocation3], 0  ;;  %s1011_s29 = sld [smem:[#allocation7_spill]]  ;;  %vm115_vm3 = vcmask 523264   ;;  %v616_v12 = vld [vmem:[%s991_s5] ss:$0 sm:$0xff]  ;;  %v65_v49 = vlaneseq }
  0x12   :  { %v624_v13 = vld [vmem:[%s995_s9] ss:$0 sm:$0xff]  ;;  %vm161_vm4 = vcmask 261120   ;;  %v766_v23 = vmov 0   ;;  %s1012_s1 = sld [smem:[#allocation5_spill]]  ;;  %v730_v35 = vld [vmem:[%s998_s12 + $0x8] sm:$0xff]  }
  0x13   :  { %672 = vmatpush3.bf16.msra.mxu0 %v729_v7  ;;  %725 = vset.pattern.permute.xlu0 %v766_v23  ;;  %v731_v36 = vld [vmem:[%s998_s12] sm:$0xff]   ;;  %v732_v37 = vld [vmem:[%s999_s13 + $0x8] sm:$0xff]   ;;  %v66_v55 = vand.u32 127, %v65_v49  ;;  %vm346_vm6 = vcmask 1041408   ;;  %vm342_vm9 = vcmask 31744   ;;  %vm599_vm12 = vcmask 130048  }
  0x14   :  { %697 = vmatprep.subr.bf16.mxu0 %v764_v1  ;;  %684 = vmatpush3.bf16.msra.mxu1 %v730_v35  ;;  %v733_v38 = vld [vmem:[%s999_s13] sm:$0xff]   ;;  %v734_v7 = vld [vmem:[%s1001_s15 + $0x8] sm:$0xff]  }
  0x15   :  { %685 = vmatprep.subr.bf16.mxu1 %v764_v1  ;;  %v622_v46 = vld [vmem:[%s992_s6] ss:$0 sm:$0xff] }
  0x16   :  { %v623_v48 = vld [vmem:[%s993_s7] ss:$0 sm:$0xff]  ;;  %s1013_s7 = sld [smem:[#allocation8_spill]] }
  0x17   :  { %v75_v8 = vld [vmem:[%s1011_s29] sm:$0xf] }
  0x18   :  { %674 = vmatmul.mubr.msk.bf16.vlgmr.msra.gmra.mxu0 %vm115_vm3, %v75_v8  ;;  %v64_v24 = vld [vmem:[%s1012_s1] sm:$0xff]  ;;  %686 = vmatpush3.bf16.msra.mxu1 %v731_v36 }
  0x19   :  { %701 = vmatprep.mubr.msk.bf16.mxu0 %vm765_vm0, %v764_v1  ;;  %698 = vmatpush3.bf16.msra.mxu0 %v732_v37  ;;  %v626_v52 = vld [vmem:[%s996_s10] ss:$0 sm:$0xff] }
  0x1a   :  { %691 = vmatprep.subr.bf16.mxu1 %v764_v1  ;;  %699 = vmatprep.subr.bf16.mxu0 %v764_v1  ;;  %v627_v56 = vld [vmem:[%s997_s11] ss:$0 sm:$0xff] }
  0x1b   :  { %v735_v8 = vld [vmem:[%s1001_s15] sm:$0xff]  }
  0x1c   :  { %v74_v59 = vld [vmem:[%s1013_s7] sm:$0x3] }
  0x1d   :  { %700 = vmatpush3.bf16.msra.mxu0 %v733_v38  ;;  %v348_v0 = vsel %vm346_vm6, %v74_v59, 0 }
  0x1e   :  { %713 = vmatprep.subr.bf16.mxu0 %v764_v1 }
  0xcd   :  { %v244_v9 = vpop.f32.mrf.mxu1 }
  0xce   :  { %v245_v17 = vadd.f32 %v624_v13, %v244_v9 }
  0xcf   :  { %v681_v10 = vpop.f32.mrf.mxu1 }
  0xd0   :  { %v252_v21 = vsel %vm161_vm4, %v245_v17, 0.0 }
  0xd1   :  { %v247_v11 = vpop.f32.mrf.mxu1 }
  0xd3   :  { %v682_v14 = vpop.f32.mrf.mxu1 }
  0xd8   :  { %v153_v15 = vpop.f32.mrf.mxu0 }
  0xd9   :  { %v154_v16 = vadd.f32 %v616_v12, %v153_v15 }
  0xda   :  { %v675_v18 = vpop.f32.mrf.mxu0 }
  0xdb   :  { %v162_v19 = vsel %vm161_vm4, %v154_v16, 0.0  ;;  %v635_v18 = vld [vmem:[%s1000_s14] ss:$0 sm:$0xff] }
  0xdc   :  { %163 = vadd.xlane.f32.xlu0 %v162_v19  ;;  %v156_v20 = vpop.f32.mrf.mxu0 }
  0xde   :  { %v676_v22 = vpop.f32.mrf.mxu0 }
  0xe0   :  { %253 = vadd.xlane.f32.xlu0 %v252_v21 }
  0xf6   :  { %68 = vperm.xlu0 %725, %v64_v24  }
 0x165   :  { %v164_v25 = vpop.xlane.xlu0 %163 }
 0x166   :  { %v166_v26 = vmul.f32 0.03125, %v164_v25 }
 0x168   :  { %v167_v27 = vsub.f32 %v154_v16, %v166_v26 }
 0x169   :  { %v254_v28 = vpop.xlane.xlu0 %253 }
 0x16a   :  { %v255_v29 = vmul.f32 0.03125, %v254_v28  ;;  %v168_v30 = vmul.f32 %v167_v27, %v167_v27  ;;  %v736_v28 = vld [vmem:[%s1003_s17 + $0x8] sm:$0xff]  }
 0x16c   :  { %v256_v31 = vsub.f32 %v245_v17, %v255_v29  ;;  %v169_v32 = vsel %vm161_vm4, %v168_v30, 0.0  ;;  %v737_v29 = vld [vmem:[%s1003_s17] sm:$0xff]   ;;  %s767_s17 = smov [#allocation2]  }
 0x16d   :  { %170 = vadd.xlane.f32.xlu1 %v169_v32  ;;  %v636_v30 = vld [vmem:[%s1002_s16] ss:$0 sm:$0xff]  ;;  %s607_s3 = sshll.u32 %s767_s17, 4  ;;  %s608_s3 = int_to_ptr.vmem [resolvable:$true] %s607_s3 }
 0x16e   :  { %v257_v33 = vmul.f32 %v256_v31, %v256_v31  ;;  %s742_s16 = scalar_lea.vmem %s608_s3, 128  ;;  %p747_p1 = scmp.lt.s32.totalorder %s608_s3, %s608_s3 }
 0x16f   :  { %p743_p0 = scmp.ne.s32.totalorder %s608_s3, %s742_s16  ;;  %p748_p2 = scmp.lt.s32.totalorder %s742_s16, %s742_s16 }
 0x170   :  { %v258_v34 = vsel %vm161_vm4, %v257_v33, 0.0 }
 0x171   :  { %259 = vadd.xlane.f32.xlu1 %v258_v34  ;;  %v69_v60 = vpop.permute.xlu0 %68  ;;  %p749_p3 = por %p748_p2, %p747_p1 }
 0x172   :  { %vm70_vm7 = vcmp.eq.s32.totalorder %v66_v55, %v69_v60 }
 0x173   :  { %v615_v3 = vsel %vm70_vm7, 1.0, %v764_v1  ;;  %p750_p4 = pnand %p749_p3, %p743_p0 }
 0x174   :  { %v73_v6 = vpack.c.bf16 %v615_v3, %v615_v3 }
 0x1f6   :  { %v171_v39 = vpop.xlane.xlu1 %170 }
 0x1f7   :  { %v172_v40 = vmul.f32 0.03125, %v171_v39 }
 0x1f9   :  { %v173_v41 = vadd.f32 1e-05, %v172_v40 }
 0x1fa   :  { %v260_v42 = vpop.xlane.xlu1 %259 }
 0x1fb   :  { %738 = vrsqrt.f32 %v173_v41  ;;  %v261_v43 = vmul.f32 0.03125, %v260_v42 }
 0x1fd   :  { %v262_v44 = vadd.f32 1e-05, %v261_v43 }
 0x1ff   :  { %740 = vrsqrt.f32 %v262_v44 }
 0x208   :  { %v739_v45 = vpop.eup %738 }
 0x209   :  { %v175_v47 = vmul.f32 %v739_v45, %v167_v27 }
 0x20b   :  { %v182_v50 = vmul.f32 %v622_v46, %v175_v47 }
 0x20c   :  { %v741_v51 = vpop.eup %740 }
 0x20d   :  { %v264_v53 = vmul.f32 %v741_v51, %v256_v31  ;;  %v189_v54 = vadd.f32 %v623_v48, %v182_v50 }
 0x20f   :  { %v271_v57 = vmul.f32 %v626_v52, %v264_v53  ;;  %vm190_vm5 = vcmp.gt.f32.partialorder %v189_v54, 0.0  ;;  %v191_v58 = vmul.f32 0.01, %v189_v54 }
 0x211   :  { %v192_v61 = vsel %vm190_vm5, %v189_v54, %v191_v58  ;;  %v278_v62 = vadd.f32 %v627_v56, %v271_v57 }
 0x212   :  { %v282_v63 = vpack.c.bf16 %v192_v61, %v192_v61 }
 0x213   :  { %vm279_vm8 = vcmp.gt.f32.partialorder %v278_v62, 0.0  ;;  %v280_v2 = vmul.f32 0.01, %v278_v62 }
 0x214   :  { %688 = vmatmul.mubr.msk.bf16.vlgmr.msra.gmra.mxu1 %vm161_vm4, %v282_v63 }
 0x215   :  { %692 = vmatpush3.bf16.msra.mxu1 %v348_v0  ;;  %v281_v4 = vsel %vm279_vm8, %v278_v62, %v280_v2  ;;  %693 = vmatprep.mubr.msk.bf16.mxu1 %vm765_vm0, %v764_v1 }
 0x216   :  { %v390_v5 = vpack.c.bf16 %v281_v4, %v281_v4  ;;  %705 = vmatprep.subr.bf16.mxu1 %v764_v1 }
 0x218   :  { %702 = vmatmul.mubr.msk.bf16.vlgmr.msra.gmra.mxu0 %vm161_vm4, %v390_v5 }
 0x219   :  { %717 = vmatprep.mubr.msk.bf16.mxu0 %vm765_vm0, %v764_v1  ;;  %714 = vmatpush3.bf16.msra.mxu0 %v736_v28 }
 0x21a   :  { %715 = vmatprep.subr.bf16.mxu0 %v764_v1 }
 0x21c   :  { %694 = vmatmul.mubr.msk.bf16.vlgmr.msra.gmra.mxu1 %vm342_vm9, %v73_v6 }
 0x21d   :  { %709 = vmatprep.mubr.msk.bf16.mxu1 %vm765_vm0, %v764_v1  ;;  %706 = vmatpush3.bf16.msra.mxu1 %v734_v7 }
 0x21e   :  { %707 = vmatprep.subr.bf16.mxu1 %v764_v1  ;;  %716 = vmatpush3.bf16.msra.mxu0 %v737_v29  ;;  %v640_v1 = vld [vmem:[%s1004_s18] ss:$0 sm:$0xff] }
 0x221   :  { %708 = vmatpush3.bf16.msra.mxu1 %v735_v8 }
 0x2d4   :  { %v336_v9 = vpop.f32.mrf.mxu1 }
 0x2d6   :  { %v689_v10 = vpop.f32.mrf.mxu1 }
 0x2d8   :  { %v339_v11 = vpop.f32.mrf.mxu1  ;;  %v444_v12 = vpop.f32.mrf.mxu0 }
 0x2da   :  { %v690_v13 = vpop.f32.mrf.mxu1  ;;  %v703_v14 = vpop.f32.mrf.mxu0 }
 0x2dc   :  { %v384_v15 = vpop.f32.mrf.mxu1  ;;  %v447_v16 = vpop.f32.mrf.mxu0 }
 0x2dd   :  { %v385_v17 = vadd.f32 %v384_v15, %v336_v9 }
 0x2de   :  { %v695_v19 = vpop.f32.mrf.mxu1  ;;  %v704_v20 = vpop.f32.mrf.mxu0 }
 0x2df   :  { %v450_v21 = vadd.f32 %v444_v12, %v385_v17 }
 0x2e0   :  { %v387_v22 = vpop.f32.mrf.mxu1 }
 0x2e1   :  { %v458_v23 = vadd.f32 %v635_v18, %v450_v21 }
 0x2e2   :  { %v696_v24 = vpop.f32.mrf.mxu1 }
 0x2e3   :  { %vm459_vm10 = vcmp.gt.f32.partialorder %v458_v23, 0.0  ;;  %v460_v25 = vmul.f32 0.01, %v458_v23 }
 0x2e5   :  { %v461_v26 = vsel %vm459_vm10, %v458_v23, %v460_v25 }
 0x2e6   :  { %v462_v27 = vpack.c.bf16 %v461_v26, %v461_v26 }
 0x2e8   :  { %710 = vmatmul.mubr.msk.bf16.vlgmr.msra.gmra.mxu1 %vm161_vm4, %v462_v27 }
 0x3a8   :  { %v523_v31 = vpop.f32.mrf.mxu1 }
 0x3a9   :  { %v524_v32 = vadd.f32 %v636_v30, %v523_v31 }
 0x3aa   :  { %v711_v33 = vpop.f32.mrf.mxu1 }
 0x3ab   :  { %vm529_vm11 = vcmp.gt.f32.partialorder %v524_v32, 0.0  ;;  %v530_v34 = vmul.f32 0.01, %v524_v32 }
 0x3ac   :  { %v526_v35 = vpop.f32.mrf.mxu1 }
 0x3ad   :  { %v531_v36 = vsel %vm529_vm11, %v524_v32, %v530_v34 }
 0x3ae   :  { %v532_v37 = vpack.c.bf16 %v531_v36, %v531_v36  ;;  %v712_v38 = vpop.f32.mrf.mxu1 }
 0x3b0   :  { %718 = vmatmul.mubr.msk.bf16.vlgmr.msra.gmra.mxu0 %vm161_vm4, %v532_v37 }
 0x470   :  { %v593_v39 = vpop.f32.mrf.mxu0 }
 0x471   :  { %v594_v40 = vadd.f32 %v640_v1, %v593_v39 }
 0x472   :  { %v719_v41 = vpop.f32.mrf.mxu0 }
 0x473   :  { %600 = vst.msk [vmem:[#allocation2] sm:$0xff] %vm599_vm12, %v594_v40 }
 0x474   :  { %v596_v42 = vpop.f32.mrf.mxu0 }
 0x475   :  { %753 = shalt.err (!%p750_p4)
}
 0x476   :  { %610 = dma.vmem_to_hbm [thread:$0]  %s608_s3, 128, %s1005_s19, [#allocation3]   ;;  %v720_v43 = vpop.f32.mrf.mxu0 }
 0x477   :  { %762 = dma.done.wait [#allocation3], 128  }
 0x478   :  { %763 = vsyncadd [#allocation3], 4294967168 }
 0x479   :  { %614 = vsyncpa [#allocation3], 1 }

</bundles_post_ra>
